<compile_context>
chip_gen: v7x
topology: tpu7x:2x2x1
jax: 0.10.0
libtpu: 0.0.40
codegen_flags: <defaults>
</compile_context>

<pallas_src>
import jax
import jax.numpy as jnp
from jax.experimental import pallas as pl
from jax.experimental.pallas import tpu as pltpu

_NEG_BIG = -1e30   # bias for padded logit columns -> softmax prob exactly 0
_LANE = 128
_SUBLANE = 8


def _round_up(x, m):
    return (x + m - 1) // m * m


def mlp_kernel(x_ref, w1_ref, b1_ref, w2_ref, b2_ref, o_ref):
    # x_ref : (TB, Din_p) f32|bf16   w1_ref: (Din_p, H_p) bf16   b1_ref: (1, H_p) f32
    # w2_ref: (H_p, Dout_p) bf16     b2_ref: (1, Dout_p) f32     o_ref : (TB, Dout_p) f32
    x = x_ref[...].astype(jnp.bfloat16)   # no-op if the wrapper already fed bf16

    # layer_input: x @ W1 + b1  (MXU, bf16 operands, f32 accumulation)
    h = jnp.dot(x, w1_ref[...], preferred_element_type=jnp.float32)
    h = h + b1_ref[...]

    # dropout (eval -> identity), then ReLU (VPU)
    h = jnp.maximum(h, 0.0)

    # layer_hidden: h @ W2 + b2  (MXU)
    logits = jnp.dot(h.astype(jnp.bfloat16), w2_ref[...],
                     preferred_element_type=jnp.float32)
    logits = logits + b2_ref[...]          # padded out-columns carry -1e30 bias

    # softmax over dim=1 (last axis), numerically stable, exact normalization.
    m = jnp.max(logits, axis=-1, keepdims=True)
    e = jnp.exp(logits - m)
    denom = jnp.sum(e, axis=-1, keepdims=True)
    o_ref[...] = (e / denom).astype(o_ref.dtype)


def _choose_tile_b(B, din_p, dout_p, x_itemsize, resident_bytes, max_tile_b):
    """Largest batch tile that fits a conservative VMEM budget."""
    # ~12 MiB keeps double-buffered x/out tiles plus the resident weights under
    # the default scoped-VMEM limit on all generations (and well under v7x's
    # 64 MiB physical VMEM), so no vmem_limit_bytes override is needed.
    budget = 12 * 1024 * 1024
    per_row = 2 * (din_p * x_itemsize + dout_p * 4)   # double-buffered in + out
    avail = max(budget - 2 * resident_bytes, per_row * _SUBLANE)
    cap = max(_SUBLANE, min(max_tile_b, (avail // per_row) // _SUBLANE * _SUBLANE))
    if B <= cap:
        return B, 1                 # single (possibly short) tile == full batch dim
    return cap, pl.cdiv(B, cap)     # multiple-of-8 tiles; final tile is masked


def mlp_forward(x_nchw, w1, b1, w2, b2, *, max_tile_b=1024):
    B = x_nchw.shape[0]
    dim_in = x_nchw.shape[1] * x_nchw.shape[-2] * x_nchw.shape[-1]
    dim_hidden = w1.shape[1]
    dim_out = w2.shape[1]

    # Flatten exactly like torch: x.view(-1, C*H*W) on a contiguous NCHW tensor.
    x_flat = x_nchw.reshape(B, dim_in)

    # Lane-friendly padded feature sizes (hidden/out stay at 128 lanes).
    h_p = _round_up(dim_hidden, _LANE)
    dout_p = _round_up(dim_out, _LANE)

    if dim_in % _LANE == 0:
        # No column padding needed -> stream x directly from HBM (no wrapper
        # copy, no standalone cast); the in-kernel bf16 cast is free.
        x_in = x_flat
        din_p = dim_in
    else:
        # A padded copy is unavoidable: fuse the bf16 cast into that single
        # pass so the kernel-side x DMA is 2 B/elem.
        din_p = _round_up(dim_in, _LANE)
        x_in = jnp.zeros((B, din_p), jnp.bfloat16).at[:, :dim_in].set(
            x_flat.astype(jnp.bfloat16))

    # Weights zero-padded (exact math) and cast to bf16 wrapper-side (half the
    # resident bytes, MXU-native operand dtype).
    w1_p = (jnp.zeros((din_p, h_p), jnp.float32)
            .at[:dim_in, :dim_hidden].set(w1).astype(jnp.bfloat16))
    w2_p = (jnp.zeros((h_p, dout_p), jnp.float32)
            .at[:dim_hidden, :dim_out].set(w2).astype(jnp.bfloat16))

    # Biases stay f32 (added to the f32 accumulator). Padded hidden bias = 0
    # (ReLU(0)=0, no effect); padded output bias = -1e30 (softmax prob 0).
    b1_p = jnp.zeros((1, h_p), jnp.float32).at[0, :dim_hidden].set(b1)
    b2_p = jnp.full((1, dout_p), _NEG_BIG, jnp.float32).at[0, :dim_out].set(b2)

    resident_bytes = (w1_p.size + w2_p.size) * 2 + (b1_p.size + b2_p.size) * 4
    x_itemsize = x_in.dtype.itemsize
    tile_b, n_tiles = _choose_tile_b(B, din_p, dout_p, x_itemsize,
                                     resident_bytes, max_tile_b)

    flops = 2 * B * (din_p * h_p + h_p * dout_p)
    bytes_accessed = x_in.size * x_itemsize + resident_bytes + B * dout_p * 4

    out_p = pl.pallas_call(
        mlp_kernel,
        out_shape=jax.ShapeDtypeStruct((B, dout_p), jnp.float32),
        grid_spec=pltpu.PrefetchScalarGridSpec(
            num_scalar_prefetch=0,
            grid=(n_tiles,),
            in_specs=[
                pl.BlockSpec((tile_b, din_p), lambda i: (i, 0)),  # x tiles (pipelined)
                pl.BlockSpec((din_p, h_p), lambda i: (0, 0)),     # W1 resident
                pl.BlockSpec((1, h_p), lambda i: (0, 0)),         # b1 resident
                pl.BlockSpec((h_p, dout_p), lambda i: (0, 0)),    # W2 resident
                pl.BlockSpec((1, dout_p), lambda i: (0, 0)),      # b2 resident
            ],
            out_specs=pl.BlockSpec((tile_b, dout_p), lambda i: (i, 0)),
        ),
        # NOTE: on v7x (2 TensorCores) an even >=2 grid can additionally be
        # marked pltpu.CORE_PARALLEL to force an equal split across both TCs;
        # kept as plain "parallel" here for portability across generations.
        compiler_params=pltpu.CompilerParams(
            dimension_semantics=("parallel",),
        ),
        cost_estimate=pl.CostEstimate(
            flops=flops,
            transcendentals=B * dout_p,
            bytes_accessed=bytes_accessed,
        ),
    )(x_in, w1_p, b1_p, w2_p, b2_p)

    # Slice away padded output columns (batch was never padded).
    return out_p[:, :dim_out]


def init_linear_params(key, fan_in, fan_out):
    # Mirror torch.nn.Linear default init: U(-1/sqrt(fan_in), 1/sqrt(fan_in)).
    kw, kb = jax.random.split(key)
    bound = 1.0 / jnp.sqrt(jnp.float32(fan_in))
    # Stored as (fan_in, fan_out) so the kernel does x @ W (== x @ W_torch.T).
    w = jax.random.uniform(kw, (fan_in, fan_out), jnp.float32, -bound, bound)
    b = jax.random.uniform(kb, (fan_out,), jnp.float32, -bound, bound)
    return w, b


if __name__ == "__main__":
    key = jax.random.PRNGKey(0)
    kx, k1, k2 = jax.random.split(key, 3)

    # Small shapes consistent with the forward: NCHW input flattened to C*H*W.
    B, C, H, W = 2, 4, 16, 16
    dim_in = C * H * W          # 1024 (lane-aligned -> no x padding copy)
    dim_hidden = 64
    dim_out = 10

    x = jax.random.normal(kx, (B, C, H, W), jnp.float32)
    w1, b1 = init_linear_params(k1, dim_in, dim_hidden)
    w2, b2 = init_linear_params(k2, dim_hidden, dim_out)

    out = mlp_forward(x, w1, b1, w2, b2)
    jax.block_until_ready(out)

    # Sanity: shape and softmax normalization (exact division -> rows sum to 1).
    assert out.shape == (B, dim_out)
    assert bool(jnp.all(jnp.abs(jnp.sum(out, axis=1) - 1.0) < 1e-3))

    # Cross-check against a plain-JAX f32 reference (bf16 matmul tolerance).
    h_ref = jnp.maximum(x.reshape(B, dim_in) @ w1 + b1, 0.0)
    ref = jax.nn.softmax(h_ref @ w2 + b2, axis=1)
    assert bool(jnp.all(jnp.abs(out - ref) < 2e-2))

    print("KERNEL_OK")
</pallas_src>

<mosaic_0001>
module attributes {stable_mosaic.version = 11 : i64} {
  func.func @mlp_kernel(%arg0: i32, %arg1: memref<2x1024xf32, #tpu.memory_space<vmem>>, %arg2: memref<1024x128xbf16, #tpu.memory_space<vmem>>, %arg3: memref<1x128xf32, #tpu.memory_space<vmem>>, %arg4: memref<128x128xbf16, #tpu.memory_space<vmem>>, %arg5: memref<1x128xf32, #tpu.memory_space<vmem>>, %arg6: memref<2x128xf32, #tpu.memory_space<vmem>>) attributes {dimension_semantics = [#tpu.dimension_semantics<parallel>], iteration_bounds = array<i64: 1>, scalar_prefetch = 0 : i64, scratch_operands = 0 : i64, tpu.core_type = #tpu.core_type<tc>, window_params = [{transform_indices = @transform_0, window_bounds = array<i64: 2, 1024>}, {pipeline_mode = #tpu.pipeline_mode<synchronous>, transform_indices = @transform_1, window_bounds = array<i64: 1024, 128>}, {pipeline_mode = #tpu.pipeline_mode<synchronous>, transform_indices = @transform_2, window_bounds = array<i64: 1, 128>}, {pipeline_mode = #tpu.pipeline_mode<synchronous>, transform_indices = @transform_3, window_bounds = array<i64: 128, 128>}, {pipeline_mode = #tpu.pipeline_mode<synchronous>, transform_indices = @transform_4, window_bounds = array<i64: 1, 128>}, {transform_indices = @transform_5, window_bounds = array<i64: 2, 128>}]} {
    %c0 = arith.constant 0 : index
    %c0_0 = arith.constant 0 : index
    %0 = vector.load %arg1[%c0, %c0_0] : memref<2x1024xf32, #tpu.memory_space<vmem>>, vector<2x1024xf32>
    %1 = arith.truncf %0 : vector<2x1024xf32> to vector<2x1024xbf16>
    %c0_1 = arith.constant 0 : index
    %c0_2 = arith.constant 0 : index
    %2 = vector.load %arg2[%c0_1, %c0_2] : memref<1024x128xbf16, #tpu.memory_space<vmem>>, vector<1024x128xbf16>
    %cst = arith.constant dense<0.000000e+00> : vector<2x128xf32>
    %3 = tpu.matmul %1, %2, %cst {dimension_numbers = #tpu.dot_dimension_numbers<[1], [0], [0], [1], [0, 0, 1, 1], [], []>} : vector<2x1024xbf16>, vector<1024x128xbf16>, vector<2x128xf32> -> vector<2x128xf32>
    %c0_3 = arith.constant 0 : index
    %c0_4 = arith.constant 0 : index
    %4 = vector.load %arg3[%c0_3, %c0_4] : memref<1x128xf32, #tpu.memory_space<vmem>>, vector<1x128xf32>
    %5 = vector.broadcast %4 : vector<1x128xf32> to vector<2x128xf32>
    %6 = arith.addf %3, %5 : vector<2x128xf32>
    %cst_5 = arith.constant 0.000000e+00 : f32
    %7 = vector.broadcast %cst_5 : f32 to vector<2x128xf32>
    %8 = arith.maximumf %6, %7 : vector<2x128xf32>
    %9 = arith.truncf %8 : vector<2x128xf32> to vector<2x128xbf16>
    %c0_6 = arith.constant 0 : index
    %c0_7 = arith.constant 0 : index
    %10 = vector.load %arg4[%c0_6, %c0_7] : memref<128x128xbf16, #tpu.memory_space<vmem>>, vector<128x128xbf16>
    %cst_8 = arith.constant dense<0.000000e+00> : vector<2x128xf32>
    %11 = tpu.matmul %9, %10, %cst_8 {dimension_numbers = #tpu.dot_dimension_numbers<[1], [0], [0], [1], [0, 0, 1, 1], [], []>} : vector<2x128xbf16>, vector<128x128xbf16>, vector<2x128xf32> -> vector<2x128xf32>
    %c0_9 = arith.constant 0 : index
    %c0_10 = arith.constant 0 : index
    %12 = vector.load %arg5[%c0_9, %c0_10] : memref<1x128xf32, #tpu.memory_space<vmem>>, vector<1x128xf32>
    %13 = vector.broadcast %12 : vector<1x128xf32> to vector<2x128xf32>
    %14 = arith.addf %11, %13 : vector<2x128xf32>
    %cst_11 = arith.constant dense<0xFF800000> : vector<2xf32>
    %15 = vector.multi_reduction <maximumf>, %14, %cst_11 [1] : vector<2x128xf32> to vector<2xf32>
    %16 = vector.shape_cast %15 : vector<2xf32> to vector<2x1xf32>
    %17 = vector.broadcast %16 : vector<2x1xf32> to vector<2x128xf32>
    %18 = arith.subf %14, %17 : vector<2x128xf32>
    %19 = math.exp %18 : vector<2x128xf32>
    %cst_12 = arith.constant dense<0.000000e+00> : vector<2xf32>
    %20 = vector.multi_reduction <add>, %19, %cst_12 [1] : vector<2x128xf32> to vector<2xf32>
    %21 = vector.shape_cast %20 : vector<2xf32> to vector<2x1xf32>
    %22 = vector.broadcast %21 : vector<2x1xf32> to vector<2x128xf32>
    %23 = arith.divf %19, %22 : vector<2x128xf32>
    %c0_13 = arith.constant 0 : index
    %c0_14 = arith.constant 0 : index
    %24 = vector.load %arg6[%c0_13, %c0_14] : memref<2x128xf32, #tpu.memory_space<vmem>>, vector<2x128xf32>
    tpu.vector_store %arg6[%c0_13, %c0_14], %23 {strides = array<i32>} : memref<2x128xf32, #tpu.memory_space<vmem>>, vector<2x128xf32>,
    return
  }
  func.func @transform_0(%arg0: i32) -> (i32, i32) {
    %c0_i32 = arith.constant 0 : i32
    %c0_i32_0 = arith.constant 0 : i32
    return %arg0, %c0_i32 : i32, i32
  }
  func.func @transform_1(%arg0: i32) -> (i32, i32) {
    %c0_i32 = arith.constant 0 : i32
    %c0_i32_0 = arith.constant 0 : i32
    %c0_i32_1 = arith.constant 0 : i32
    return %c0_i32, %c0_i32_0 : i32, i32
  }
  func.func @transform_2(%arg0: i32) -> (i32, i32) {
    %c0_i32 = arith.constant 0 : i32
    %c0_i32_0 = arith.constant 0 : i32
    %c0_i32_1 = arith.constant 0 : i32
    return %c0_i32, %c0_i32_0 : i32, i32
  }
  func.func @transform_3(%arg0: i32) -> (i32, i32) {
    %c0_i32 = arith.constant 0 : i32
    %c0_i32_0 = arith.constant 0 : i32
    %c0_i32_1 = arith.constant 0 : i32
    return %c0_i32, %c0_i32_0 : i32, i32
  }
  func.func @transform_4(%arg0: i32) -> (i32, i32) {
    %c0_i32 = arith.constant 0 : i32
    %c0_i32_0 = arith.constant 0 : i32
    %c0_i32_1 = arith.constant 0 : i32
    return %c0_i32, %c0_i32_0 : i32, i32
  }
  func.func @transform_5(%arg0: i32) -> (i32, i32) {
    %c0_i32 = arith.constant 0 : i32
    %c0_i32_0 = arith.constant 0 : i32
    return %arg0, %c0_i32 : i32, i32
  }
}

</mosaic_0001>

<bundles_post_ra>
// kernel: tpu_custom_call.1
= control target key start
LH: loop header
LB: loop body
LE: loop exit
PB: predicated region body
PF: predicated region fallthrough
CT: control target
= control target key end

     0   :  { %10 = vsyncpa [#allocation3], 0  ;;  %s1413_s0 = inlined_call_operand.hbm [shape: f32[2,1024], index: 0, kind: input, shape index: {}]   ;;  %s1414_s1 = inlined_call_operand.hbm [shape: bf16[1024,128], index: 1, kind: input, shape index: {}]   ;;  %s1415_s2 = inlined_call_operand.vmem [shape: f32[1,128], index: 2, kind: input, shape index: {}]   ;;  %s1416_s3 = inlined_call_operand.hbm [shape: bf16[128,128], index: 3, kind: input, shape index: {}]   ;;  %s1417_s4 = inlined_call_operand.vmem [shape: f32[1,128], index: 4, kind: input, shape index: {}]   ;;  %s1418_s5 = inlined_call_operand.hbm [shape: f32[2,128], index: 5, kind: output, shape index: {}]  }
   0x1   :  { %11 = vsyncpa [#allocation6], 0 }
   0x2   :  { %12 = vsyncpa [#allocation4], 0  ;;  %s1308_s18 = smov [#allocation5]   ;;  %s1214_s22 = scalar_lea.hbm %s1414_s1, 8192 }
   0x3   :  { %s28_s19 = sshll.u32 %s1308_s18, 4  ;;  %p1215_p0 = scmp.ne.s32.totalorder %s1414_s1, %s1214_s22  ;;  %s29_s19 = int_to_ptr.vmem [resolvable:$true] %s28_s19 }
   0x4   :  { %p1218_p1 = scmp.lt.u32.totalorder %s1214_s22, %s1414_s1 }
   0x6   :  { %p1220_p2 = pnand %p1218_p1, %p1215_p0 }
   0x8   :  { %1223 = shalt.err (!%p1220_p2)
}
   0x9   :  { %s1224_s27 = scalar_lea.vmem %s29_s19, 8192  ;;  %p1229_p4 = scmp.lt.s32.totalorder %s29_s19, %s29_s19 }
   0xa   :  { %p1225_p3 = scmp.ne.s32.totalorder %s29_s19, %s1224_s27  ;;  %p1230_p5 = scmp.lt.s32.totalorder %s1224_s27, %s1224_s27 }
   0xc   :  { %p1231_p6 = por %p1230_p5, %p1229_p4 }
   0xe   :  { %p1232_p7 = pnand %p1231_p6, %p1225_p3 }
  0x10   :  { %1235 = shalt.err (!%p1232_p7)
}
  0x11   :  { %s1309_s28 = smov 64   ;;  %s1310_s29 = smov 4  }
  0x12   :  { %34 = dma.hbm_to_vmem [thread:$0]  %s1414_s1, 8192, %s29_s19, [#allocation6], %s1309_s28, %s1309_s28, %s1310_s29  }
  0x13   :  { %s1311_s7 = smov [#allocation2]   ;;  %s1312_s9 = smov [#allocation7]  }
  0x14   :  { %s19_s8 = sshll.u32 %s1311_s7, 4  ;;  %s42_s10 = sshll.u32 %s1312_s9, 4  ;;  %s20_s8 = int_to_ptr.vmem [resolvable:$true] %s19_s8  ;;  %s43_s10 = int_to_ptr.vmem [resolvable:$true] %s42_s10 }
  0x15   :  { %s1236_s13 = scalar_lea.hbm %s1413_s0, 256 }
  0x16   :  { %p1237_p8 = scmp.ne.s32.totalorder %s1413_s0, %s1236_s13  ;;  %p1240_p9 = scmp.lt.u32.totalorder %s1236_s13, %s1413_s0 }
  0x18   :  { %p1242_p10 = pnand %p1240_p9, %p1237_p8 }
  0x1a   :  { %1245 = shalt.err (!%p1242_p10)
}
  0x1b   :  { %s1246_s1 = scalar_lea.vmem %s20_s8, 256  ;;  %p1251_p12 = scmp.lt.s32.totalorder %s20_s8, %s20_s8 }
  0x1c   :  { %p1247_p11 = scmp.ne.s32.totalorder %s20_s8, %s1246_s1  ;;  %p1252_p13 = scmp.lt.s32.totalorder %s1246_s1, %s1246_s1 }
  0x1e   :  { %p1253_p0 = por %p1252_p13, %p1251_p12 }
  0x20   :  { %p1254_p1 = pnand %p1253_p0, %p1247_p11 }
  0x22   :  { %1257 = shalt.err (!%p1254_p1)
}
  0x23   :  { %22 = dma.hbm_to_vmem [thread:$0]  %s1413_s0, 256, %s20_s8, [#allocation3]  }
  0x24   :  { %s1258_s22 = scalar_lea.hbm %s1416_s3, 1024 }
  0x25   :  { %p1259_p2 = scmp.ne.s32.totalorder %s1416_s3, %s1258_s22  ;;  %p1262_p3 = scmp.lt.u32.totalorder %s1258_s22, %s1416_s3 }
  0x27   :  { %p1264_p4 = pnand %p1262_p3, %p1259_p2 }
  0x29   :  { %1267 = shalt.err (!%p1264_p4)
}
  0x2a   :  { %s1268_s27 = scalar_lea.vmem %s43_s10, 1024  ;;  %p1273_p6 = scmp.lt.s32.totalorder %s43_s10, %s43_s10 }
  0x2b   :  { %p1269_p5 = scmp.ne.s32.totalorder %s43_s10, %s1268_s27  ;;  %p1274_p7 = scmp.lt.s32.totalorder %s1268_s27, %s1268_s27 }
  0x2d   :  { %p1275_p8 = por %p1274_p7, %p1273_p6 }
  0x2f   :  { %p1276_p9 = pnand %p1275_p8, %p1269_p5 }
  0x31   :  { %1279 = shalt.err (!%p1276_p9)
}
  0x32   :  { %48 = dma.hbm_to_vmem [thread:$0]  %s1416_s3, 1024, %s43_s10, [#allocation6], %s1309_s28, %s1309_s28, %s1310_s29  }
  0x33   :  { %1302 = dma.done.wait [#allocation3], 256  }
  0x34   :  { %1303 = vsyncadd [#allocation3], 4294967040 }
  0x35   :  { %1304 = dma.done.wait [#allocation6], 9216  }
  0x36   :  { %1305 = vsyncadd [#allocation6], 4294958080  ;;  %v1136_v0 = vld [vmem:[#allocation5 + $0x40] sm:$0xff]   ;;  %v1140_v4 = vld [vmem:[#allocation5 + $0x48] sm:$0xff]   ;;  %v1313_v22 = vmov 1983009808   ;;  %v69_v24 = vlaneseq }
  0x37   :  { %v1137_v1 = vld [vmem:[#allocation5 + $0xc0] sm:$0xff]   ;;  %1010 = vmatprep.subr.bf16.mxu0 %v1136_v0  ;;  %v1141_v5 = vld [vmem:[#allocation5 + $0xc8] sm:$0xff]   ;;  %v1144_v8 = vld [vmem:[#allocation5 + $0x50] sm:$0xff]   ;;  %v67_v23 = vunpack.c.l.s4 %v1313_v22  ;;  %vm1315_vm0 = vmmov 0   ;;  %vm907_vm1 = vcmask 1041408   ;;  %s1316_s6 = smov [#allocation8]  }
  0x38   :  { %v1138_v2 = vld [vmem:[#allocation5] sm:$0xff]   ;;  %1032 = vmatprep.subr.bf16.mxu1 %v1137_v1  ;;  %v1142_v6 = vld [vmem:[#allocation5 + $0x8] sm:$0xff]   ;;  %v1145_v9 = vld [vmem:[#allocation5 + $0xd0] sm:$0xff]   ;;  %v70_v30 = vshrl.u32 %v69_v24, 7  ;;  %s926_s7 = sshll.u32 %s1316_s6, 4  ;;  %s927_s7 = int_to_ptr.vmem [resolvable:$true] %s926_s7 }
  0x39   :  { %v1139_v3 = vld [vmem:[#allocation5 + $0x80] sm:$0xff]   ;;  %1011 = vmatpush3.bf16.msra.mxu0 %v1138_v2  ;;  %v1143_v7 = vld [vmem:[#allocation5 + $0x88] sm:$0xff]   ;;  %v1146_v10 = vld [vmem:[#allocation5 + $0x10] sm:$0xff]   ;;  %v68_v29 = vunpack.c.0.s8 %v67_v23  ;;  %p1285_p11 = scmp.lt.s32.totalorder %s927_s7, %s927_s7 }
  0x3a   :  { %1033 = vmatpush3.bf16.msra.mxu1 %v1139_v3  ;;  %1012 = vmatprep.subr.bf16.mxu0 %v1140_v4  ;;  %v1147_v11 = vld [vmem:[#allocation5 + $0x90] sm:$0xff]   ;;  %v1148_v12 = vld [vmem:[#allocation5 + $0x58] sm:$0xff]   ;;  %v1152_v16 = vld [vmem:[#allocation5 + $0x60] sm:$0xff]  }
  0x3b   :  { %1034 = vmatprep.subr.bf16.mxu1 %v1141_v5  ;;  %v1149_v13 = vld [vmem:[#allocation5 + $0xd8] sm:$0xff]   ;;  %v1153_v17 = vld [vmem:[#allocation5 + $0xe0] sm:$0xff]   ;;  %v1156_v20 = vld [vmem:[#allocation5 + $0x68] sm:$0xff]   ;;  %v1389_v35 = vsub.s32 %v68_v29, %v70_v30 }
  0x3c   :  { %v1150_v14 = vld [vmem:[#allocation5 + $0x18] sm:$0xff]   ;;  %v1154_v18 = vld [vmem:[#allocation5 + $0x20] sm:$0xff]   ;;  %v1157_v21 = vld [vmem:[#allocation5 + $0xe8] sm:$0xff]  }
  0x3d   :  { %1013 = vmatpush3.bf16.msra.mxu0 %v1142_v6  ;;  %v1151_v15 = vld [vmem:[#allocation5 + $0x98] sm:$0xff]   ;;  %v1155_v19 = vld [vmem:[#allocation5 + $0xa0] sm:$0xff]   ;;  %v1158_v25 = vld [vmem:[#allocation5 + $0x28] sm:$0xff]  }
  0x3e   :  { %1035 = vmatpush3.bf16.msra.mxu1 %v1143_v7  ;;  %1014 = vmatprep.subr.bf16.mxu0 %v1144_v8  ;;  %v1159_v26 = vld [vmem:[#allocation5 + $0xa8] sm:$0xff]   ;;  %v1160_v27 = vld [vmem:[#allocation5 + $0x70] sm:$0xff]   ;;  %v1164_v33 = vld [vmem:[#allocation5 + $0x78] sm:$0xff]  }
  0x3f   :  { %1036 = vmatprep.subr.bf16.mxu1 %v1145_v9  ;;  %v1161_v28 = vld [vmem:[#allocation5 + $0xf0] sm:$0xff]   ;;  %v1165_v34 = vld [vmem:[#allocation5 + $0xf8] sm:$0xff]   ;;  %v1169_v41 = vld [vmem:[#allocation5 + $0x140] sm:$0xff]  }
  0x40   :  { %v1162_v31 = vld [vmem:[#allocation5 + $0x30] sm:$0xff]   ;;  %v1166_v36 = vld [vmem:[#allocation5 + $0x38] sm:$0xff]   ;;  %v1170_v42 = vld [vmem:[#allocation5 + $0x1c0] sm:$0xff]  }
  0x41   :  { %1015 = vmatpush3.bf16.msra.mxu0 %v1146_v10  ;;  %v1163_v32 = vld [vmem:[#allocation5 + $0xb0] sm:$0xff]   ;;  %v1167_v37 = vld [vmem:[#allocation5 + $0xb8] sm:$0xff]   ;;  %v1171_v46 = vld [vmem:[#allocation5 + $0x100] sm:$0xff]  }
  0x42   :  { %1037 = vmatpush3.bf16.msra.mxu1 %v1147_v11  ;;  %1016 = vmatprep.subr.bf16.mxu0 %v1148_v12  ;;  %v61_v38 = vld [vmem:[#allocation2] sm:$0xff]  ;;  %v1172_v49 = vld [vmem:[#allocation5 + $0x180] sm:$0xff]   ;;  %v1173_v51 = vld [vmem:[#allocation5 + $0x148] sm:$0xff]  }
  0x43   :  { %1038 = vmatprep.subr.bf16.mxu1 %v1149_v13  ;;  %v72_v39 = vrot.slane %v61_v38, %v1389_v35  ;;  %v65_v40 = vcombine.high %v61_v38, %v61_v38  ;;  %v1174_v53 = vld [vmem:[#allocation5 + $0x1c8] sm:$0xff]   ;;  %v1177_v56 = vld [vmem:[#allocation5 + $0x150] sm:$0xff]   ;;  %v1181_v60 = vld [vmem:[#allocation5 + $0x158] sm:$0xff]  }
  0x44   :  { %v1175_v54 = vld [vmem:[#allocation5 + $0x108] sm:$0xff]   ;;  %v1178_v57 = vld [vmem:[#allocation5 + $0x1d0] sm:$0xff]   ;;  %v1182_v61 = vld [vmem:[#allocation5 + $0x1d8] sm:$0xff]  }
  0x45   :  { %1017 = vmatpush3.bf16.msra.mxu0 %v1150_v14  ;;  %v80_v43 = vcombine.high %v72_v39, %v72_v39  ;;  %v79_v44 = vrot.slane %v65_v40, %v1389_v35  ;;  %v107_v45 = vpack.c.bf16 %v72_v39, %v72_v39  ;;  %v1176_v55 = vld [vmem:[#allocation5 + $0x188] sm:$0xff]   ;;  %v1179_v58 = vld [vmem:[#allocation5 + $0x110] sm:$0xff]   ;;  %v1183_v62 = vld [vmem:[#allocation5 + $0x118] sm:$0xff]  }
  0x46   :  { %1039 = vmatpush3.bf16.msra.mxu1 %v1151_v15  ;;  %1018 = vmatprep.subr.bf16.mxu0 %v1152_v16  ;;  %v1180_v59 = vld [vmem:[#allocation5 + $0x190] sm:$0xff]   ;;  %v1184_v63 = vld [vmem:[#allocation5 + $0x198] sm:$0xff]   ;;  %v1185_v0 = vld [vmem:[#allocation5 + $0x160] sm:$0xff]  }
  0x47   :  { %1040 = vmatprep.subr.bf16.mxu1 %v1153_v17  ;;  %v108_v47 = vpack.c.bf16 %v80_v43, %v80_v43  ;;  %v81_v48 = vcombine.high %v79_v44, %v79_v44  ;;  %v109_v50 = vpack.c.bf16 %v79_v44, %v79_v44  ;;  %v1186_v1 = vld [vmem:[#allocation5 + $0x1e0] sm:$0xff]   ;;  %v1189_v4 = vld [vmem:[#allocation5 + $0x168] sm:$0xff]   ;;  %v1193_v8 = vld [vmem:[#allocation5 + $0x170] sm:$0xff]  }
  0x48   :  { %v1187_v2 = vld [vmem:[#allocation5 + $0x120] sm:$0xff]   ;;  %v1190_v5 = vld [vmem:[#allocation5 + $0x1e8] sm:$0xff]   ;;  %v1194_v9 = vld [vmem:[#allocation5 + $0x1f0] sm:$0xff]  }
  0x49   :  { %1019 = vmatpush3.bf16.msra.mxu0 %v1154_v18  ;;  %666 = vmatprep.mubr.bf16.mxu0 %v108_v47  ;;  %v110_v52 = vpack.c.bf16 %v81_v48, %v81_v48  ;;  %v1188_v3 = vld [vmem:[#allocation5 + $0x1a0] sm:$0xff]   ;;  %v1191_v6 = vld [vmem:[#allocation5 + $0x128] sm:$0xff]   ;;  %v1195_v10 = vld [vmem:[#allocation5 + $0x130] sm:$0xff]  }
  0x4a   :  { %1041 = vmatpush3.bf16.msra.mxu1 %v1155_v19  ;;  %1020 = vmatprep.subr.bf16.mxu0 %v1156_v20  ;;  %v1192_v7 = vld [vmem:[#allocation5 + $0x1a8] sm:$0xff]   ;;  %v1196_v11 = vld [vmem:[#allocation5 + $0x1b0] sm:$0xff]   ;;  %v1197_v12 = vld [vmem:[#allocation5 + $0x178] sm:$0xff]  }
  0x4b   :  { %1042 = vmatprep.subr.bf16.mxu1 %v1157_v21  ;;  %706 = vmatprep.mubr.bf16.mxu1 %v110_v52  ;;  %v1198_v13 = vld [vmem:[#allocation5 + $0x1f8] sm:$0xff]   ;;  %v1204_v29 = vld [vmem:[#allocation7 + $0x10] sm:$0xff]  }
  0x4c   :  { %v1199_v14 = vld [vmem:[#allocation5 + $0x138] sm:$0xff]  }
  0x4d   :  { %1021 = vmatpush3.bf16.msra.mxu0 %v1158_v25  ;;  %v62_v15 = vld [vmem:[#allocation2 + $0x8] sm:$0xff] }
  0x4e   :  { %1043 = vmatpush3.bf16.msra.mxu1 %v1159_v26  ;;  %1022 = vmatprep.subr.bf16.mxu0 %v1160_v27  ;;  %v1200_v16 = vld [vmem:[#allocation5 + $0x1b8] sm:$0xff]   ;;  %v89_v17 = vrot.slane %v62_v15, %v1389_v35  ;;  %v82_v18 = vcombine.high %v62_v15, %v62_v15  ;;  %v1202_v26 = vld [vmem:[#allocation7] sm:$0xff]   ;;  %v1314_v27 = vmov 0.0  }
  0x4f   :  { %1044 = vmatprep.subr.bf16.mxu1 %v1161_v28  ;;  %v1203_v28 = vld [vmem:[#allocation7 + $0x8] sm:$0xff]   ;;  %v1205_v30 = vld [vmem:[#allocation7 + $0x18] sm:$0xff]  }
  0x50   :  { %v97_v19 = vcombine.high %v89_v17, %v89_v17  ;;  %v96_v20 = vrot.slane %v82_v18, %v1389_v35  ;;  %v111_v21 = vpack.c.bf16 %v89_v17, %v89_v17 }
  0x51   :  { %1023 = vmatpush3.bf16.msra.mxu0 %v1162_v31  ;;  %v1206_v31 = vld [vmem:[#allocation7 + $0x20] sm:$0xff]  }
  0x52   :  { %1045 = vmatpush3.bf16.msra.mxu1 %v1163_v32  ;;  %1024 = vmatprep.subr.bf16.mxu0 %v1164_v33  ;;  %v112_v22 = vpack.c.bf16 %v97_v19, %v97_v19  ;;  %v98_v23 = vcombine.high %v96_v20, %v96_v20  ;;  %v113_v24 = vpack.c.bf16 %v96_v20, %v96_v20  ;;  %v1207_v32 = vld [vmem:[#allocation7 + $0x28] sm:$0xff]   ;;  %v1208_v33 = vld [vmem:[#allocation7 + $0x30] sm:$0xff]  }
  0x53   :  { %1046 = vmatprep.subr.bf16.mxu1 %v1165_v34  ;;  %v1209_v34 = vld [vmem:[#allocation7 + $0x38] sm:$0xff]  }
  0x54   :  { %v114_v25 = vpack.c.bf16 %v98_v23, %v98_v23 }
  0x55   :  { %1025 = vmatpush3.bf16.msra.mxu0 %v1166_v36  ;;  %v936_v36 = vld [vmem:[%s1415_s2] ss:$0 sm:$0xff] }
  0x56   :  { %1047 = vmatpush3.bf16.msra.mxu1 %v1167_v37  ;;  %1054 = vmatprep.subr.bf16.mxu0 %v1169_v41 }
  0x57   :  { %1076 = vmatprep.subr.bf16.mxu1 %v1170_v42 }
  0x58   :  { %667 = vmatmul.mubr.bf16.vlgmr.msra.gmra.mrb[0].mxu0 %v107_v45 }
  0x59   :  { %1055 = vmatpush3.bf16.msra.mxu0 %v1171_v46  ;;  %707 = vmatmul.mubr.bf16.vlgmr.msra.gmra.mrb[0].mxu1 %v109_v50 }
  0x5a   :  { %1056 = vmatprep.subr.bf16.mxu0 %v1173_v51  ;;  %1077 = vmatpush3.bf16.msra.mxu1 %v1172_v49 }
  0x5b   :  { %1078 = vmatprep.subr.bf16.mxu1 %v1174_v53  ;;  %746 = vmatprep.mubr.bf16.mxu0 %v112_v22 }
  0x5c   :  { %786 = vmatprep.mubr.bf16.mxu1 %v114_v25 }
  0x5d   :  { %1057 = vmatpush3.bf16.msra.mxu0 %v1175_v54 }
  0x5e   :  { %1058 = vmatprep.subr.bf16.mxu0 %v1177_v56  ;;  %1079 = vmatpush3.bf16.msra.mxu1 %v1176_v55 }
  0x5f   :  { %1080 = vmatprep.subr.bf16.mxu1 %v1178_v57 }
  0x61   :  { %1059 = vmatpush3.bf16.msra.mxu0 %v1179_v58 }
  0x62   :  { %1060 = vmatprep.subr.bf16.mxu0 %v1181_v60  ;;  %1081 = vmatpush3.bf16.msra.mxu1 %v1180_v59 }
  0x63   :  { %1082 = vmatprep.subr.bf16.mxu1 %v1182_v61 }
  0x65   :  { %1061 = vmatpush3.bf16.msra.mxu0 %v1183_v62  ;;  %v1001_v62 = vld [vmem:[%s1417_s4] ss:$0 sm:$0xff]  ;;  %s1280_s4 = scalar_lea.vmem %s927_s7, 32 }
  0x66   :  { %1062 = vmatprep.subr.bf16.mxu0 %v1185_v0  ;;  %1083 = vmatpush3.bf16.msra.mxu1 %v1184_v63  ;;  %p1281_p10 = scmp.ne.s32.totalorder %s927_s7, %s1280_s4  ;;  %p1286_p12 = scmp.lt.s32.totalorder %s1280_s4, %s1280_s4 }
  0x67   :  { %1084 = vmatprep.subr.bf16.mxu1 %v1186_v1 }
  0x68   :  { %p1287_p13 = por %p1286_p12, %p1285_p11 }
  0x69   :  { %1063 = vmatpush3.bf16.msra.mxu0 %v1187_v2 }
  0x6a   :  { %1064 = vmatprep.subr.bf16.mxu0 %v1189_v4  ;;  %1085 = vmatpush3.bf16.msra.mxu1 %v1188_v3  ;;  %p1288_p0 = pnand %p1287_p13, %p1281_p10 }
  0x6b   :  { %1086 = vmatprep.subr.bf16.mxu1 %v1190_v5 }
  0x6d   :  { %1065 = vmatpush3.bf16.msra.mxu0 %v1191_v6 }
  0x6e   :  { %1066 = vmatprep.subr.bf16.mxu0 %v1193_v8  ;;  %1087 = vmatpush3.bf16.msra.mxu1 %v1192_v7 }
  0x6f   :  { %1088 = vmatprep.subr.bf16.mxu1 %v1194_v9 }
  0x71   :  { %1067 = vmatpush3.bf16.msra.mxu0 %v1195_v10 }
  0x72   :  { %1068 = vmatprep.subr.bf16.mxu0 %v1197_v12  ;;  %1089 = vmatpush3.bf16.msra.mxu1 %v1196_v11 }
  0x73   :  { %1090 = vmatprep.subr.bf16.mxu1 %v1198_v13 }
  0x75   :  { %1069 = vmatpush3.bf16.msra.mxu0 %v1199_v14 }
  0x76   :  { %1091 = vmatpush3.bf16.msra.mxu1 %v1200_v16  ;;  %1107 = vmatprep.subr.bf16.mxu0 %v1314_v27 }
  0x78   :  { %747 = vmatmul.mubr.bf16.vlgmr.msra.gmra.mrb[4].mxu0 %v111_v21 }
  0x79   :  { %787 = vmatmul.mubr.bf16.vlgmr.msra.gmra.mrb[4].mxu1 %v113_v24  ;;  %1108 = vmatpush3.bf16.msra.mxu0 %v1202_v26 }
  0x7a   :  { %1109 = vmatprep.subr.bf16.mxu0 %v1314_v27  ;;  %1123 = vmatprep.mubr.msk.bf16.mxu0 %vm1315_vm0, %v1314_v27 }
  0x7d   :  { %1110 = vmatpush3.bf16.msra.mxu0 %v1203_v28 }
  0x7e   :  { %1111 = vmatprep.subr.bf16.mxu0 %v1314_v27 }
  0x81   :  { %1112 = vmatpush3.bf16.msra.mxu0 %v1204_v29 }
  0x82   :  { %1113 = vmatprep.subr.bf16.mxu0 %v1314_v27 }
  0x85   :  { %1114 = vmatpush3.bf16.msra.mxu0 %v1205_v30 }
  0x86   :  { %1115 = vmatprep.subr.bf16.mxu0 %v1314_v27 }
  0x89   :  { %1116 = vmatpush3.bf16.msra.mxu0 %v1206_v31 }
  0x8a   :  { %1117 = vmatprep.subr.bf16.mxu0 %v1314_v27 }
  0x8d   :  { %1118 = vmatpush3.bf16.msra.mxu0 %v1207_v32 }
  0x8e   :  { %1119 = vmatprep.subr.bf16.mxu0 %v1314_v27 }
  0x91   :  { %1120 = vmatpush3.bf16.msra.mxu0 %v1208_v33 }
  0x92   :  { %1121 = vmatprep.subr.bf16.mxu0 %v1314_v27 }
  0x95   :  { %1122 = vmatpush3.bf16.msra.mxu0 %v1209_v34 }
 0x12b   :  { %v1026_v35 = vpop.f32.mrb[0].mxu0 }
 0x12c   :  { %v1027_v37 = vpop.f32.mrb[1].mxu0  ;;  %v1048_v38 = vpop.f32.mrb[0].mxu1 }
 0x12d   :  { %v1028_v39 = vadd.f32 %v1027_v37, %v1026_v35  ;;  %v1029_v40 = vpop.f32.mrb[2].mxu0  ;;  %v1049_v41 = vpop.f32.mrb[1].mxu1 }
 0x12e   :  { %v1030_v42 = vpop.f32.mrb[3].mxu0  ;;  %v1050_v44 = vadd.f32 %v1049_v41, %v1048_v38  ;;  %v1051_v45 = vpop.f32.mrb[2].mxu1 }
 0x12f   :  { %v669_v43 = vadd.f32 %v1028_v39, %v936_v36  ;;  %v1052_v46 = vpop.f32.mrb[3].mxu1 }
 0x131   :  { %v709_v47 = vadd.f32 %v1050_v44, %v669_v43 }
 0x14b   :  { %v1070_v48 = vpop.f32.mrb[4].mxu0 }
 0x14c   :  { %v1071_v49 = vpop.f32.mrb[5].mxu0  ;;  %v1092_v50 = vpop.f32.mrb[4].mxu1 }
 0x14d   :  { %v1072_v51 = vadd.f32 %v1071_v49, %v1070_v48  ;;  %v1073_v52 = vpop.f32.mrb[6].mxu0  ;;  %v1093_v53 = vpop.f32.mrb[5].mxu1 }
 0x14e   :  { %v1074_v54 = vpop.f32.mrb[7].mxu0  ;;  %v1094_v56 = vadd.f32 %v1093_v53, %v1092_v50  ;;  %v1095_v57 = vpop.f32.mrb[6].mxu1 }
 0x14f   :  { %v749_v55 = vadd.f32 %v1072_v51, %v709_v47  ;;  %v1096_v58 = vpop.f32.mrb[7].mxu1 }
 0x151   :  { %v789_v59 = vadd.f32 %v1094_v56, %v749_v55 }
 0x153   :  { %v794_v60 = vmax.f32 %v789_v59, 0.0 }
 0x155   :  { %v795_v61 = vpack.c.bf16 %v794_v60, %v794_v60 }
 0x157   :  { %1124 = vmatmul.mubr.bf16.vlgmr.msra.gmra.mrb[8].mxu0 %v795_v61 }
 0x22a   :  { %v901_v63 = vpop.f32.mrb[8].mxu0 }
 0x22b   :  { %v902_v0 = vadd.f32 %v1001_v62, %v901_v63  ;;  %v1125_v1 = vpop.f32.mrb[9].mxu0 }
 0x22c   :  { %v904_v2 = vpop.f32.mrb[10].mxu0 }
 0x22d   :  { %v1126_v3 = vpop.f32.mrb[11].mxu0  ;;  %v908_v4 = vsel %vm907_vm1, %v902_v0, -inf }
 0x22e   :  { %909 = vmax.xlane.f32.xlu0 %v908_v4 }
 0x2bb   :  { %v910_v5 = vpop.xlane.xlu0 %909 }
 0x2bc   :  { %v911_v6 = vsub.f32 %v902_v0, %v910_v5 }
 0x2be   :  { %v912_v7 = vmul.f32 1.442695, %v911_v6 }
 0x2c0   :  { %1210 = vpow2.f32 %v912_v7 }
 0x2ca   :  { %v1211_v8 = vpop.eup %1210 }
 0x2cb   :  { %v914_v9 = vsel %vm907_vm1, %v1211_v8, 0.0 }
 0x2cc   :  { %915 = vadd.xlane.f32.xlu0 %v914_v9 }
 0x359   :  { %v916_v10 = vpop.xlane.xlu0 %915 }
 0x35a   :  { %1212 = vrcp.f32 %v916_v10 }
 0x364   :  { %v1213_v11 = vpop.eup %1212 }
 0x365   :  { %v918_v12 = vmul.f32 %v1213_v11, %v1211_v8 }
 0x367   :  { %919 = vst [vmem:[#allocation8] sm:$0x3] %v918_v12 }
 0x368   :  { %1291 = shalt.err (!%p1288_p0)
}
 0x369   :  { %s1292_s10 = scalar_lea.hbm %s1418_s5, 32 }
 0x36a   :  { %p1293_p1 = scmp.ne.s32.totalorder %s1418_s5, %s1292_s10  ;;  %p1296_p2 = scmp.lt.u32.totalorder %s1292_s10, %s1418_s5 }
 0x36c   :  { %p1298_p3 = pnand %p1296_p2, %p1293_p1 }
 0x36e   :  { %1301 = shalt.err (!%p1298_p3)
}
 0x36f   :  { %929 = dma.vmem_to_hbm [thread:$0]  %s927_s7, 32, %s1418_s5, [#allocation4]  }
 0x370   :  { %1306 = dma.done.wait [#allocation4], 32  }
 0x371   :  { %1307 = vsyncadd [#allocation4], 4294967264 }
 0x372   :  { %933 = vsyncpa [#allocation3], 1 }
 0x373   :  { %934 = vsyncpa [#allocation6], 1 }
 0x374   :  { %935 = vsyncpa [#allocation4], 1 }

</bundles_post_ra>
